<compile_context>
chip_gen: v7x
topology: tpu7x:2x2x1
jax: 0.10.0
libtpu: 0.0.40
codegen_flags: <defaults>
</compile_context>

<pallas_src>
import functools

import jax
import jax.numpy as jnp
from jax.experimental import pallas as pl
from jax.experimental.pallas import tpu as pltpu


def _round_up(x, m):
    return ((x + m - 1) // m) * m


def _choose_tile_rows(n, c, itemsize, vmem_budget_bytes=8 * 1024 * 1024):
    """Rows per CE tile: keep 2 pipeline buffers of the (tn, C) logits tile under
    ~8 MiB (safe for v5e's 16 MiB scoped default and v7x's 64 MiB VMEM)."""
    by_budget = max(8, vmem_budget_bytes // (2 * max(c, 1) * itemsize))
    tn = min(1024, by_budget, _round_up(n, 8))
    return _round_up(tn, 8)


def _criterion_kernel(logits_ref, labels_ref, mask_ref,
                      pos_p_ref, pos_g_ref,
                      lat_p_ref, lat_g_ref,
                      out_ref,
                      ce_acc, msk_acc,
                      *, n_total):
    i = pl.program_id(0)

    @pl.when(i == 0)
    def _init():
        ce_acc[...] = jnp.zeros_like(ce_acc)
        msk_acc[...] = jnp.zeros_like(msk_acc)

    # ---- masked cross-entropy, one (tile_rows, C) tile per grid step ----
    logits = logits_ref[...].astype(jnp.float32)            # (tn, C) upcast in VMEM
    tn, c = logits.shape
    row_max = jnp.max(logits, axis=-1, keepdims=True)        # (tn, 1)
    shifted = logits - row_max
    sum_exp = jnp.sum(jnp.exp(shifted), axis=-1, keepdims=True)
    labels = labels_ref[...]                                  # (tn, 1) int32
    col_idx = jax.lax.broadcasted_iota(jnp.int32, (tn, c), 1)
    picked_shifted = jnp.sum(jnp.where(col_idx == labels, shifted, 0.0),
                             axis=-1, keepdims=True)          # logits[label] - row_max
    ce_items = jnp.log(sum_exp) - picked_shifted              # = -log_softmax[label]

    # Mask out rows past N (padded tail of the last tile may hold garbage).
    row_ids = i * tn + jax.lax.broadcasted_iota(jnp.int32, (tn, 1), 0)
    valid = row_ids < n_total
    maskv = mask_ref[...].astype(jnp.float32)                 # (tn, 1)
    ce_contrib = jnp.where(valid, ce_items * maskv, 0.0)
    msk_contrib = jnp.where(valid, maskv, 0.0)
    ce_acc[...] += jnp.sum(ce_contrib, keepdims=True)         # f32 accumulators
    msk_acc[...] += jnp.sum(msk_contrib, keepdims=True)

    # ---- finalize: tiny L1 terms (VMEM-resident blocks) + combine ----
    @pl.when(i == pl.num_programs(0) - 1)
    def _finalize():
        pos_d = pos_p_ref[...].astype(jnp.float32) - pos_g_ref[...].astype(jnp.float32)
        pos_loss = jnp.sum(jnp.abs(pos_d), keepdims=True) * (1.0 / pos_d.size)
        lat_d = lat_p_ref[...].astype(jnp.float32) - lat_g_ref[...].astype(jnp.float32)
        lat_loss = jnp.sum(jnp.abs(lat_d), keepdims=True) * (1.0 / lat_d.size)
        atom_loss = ce_acc[...] * pl.reciprocal(msk_acc[...])
        out_ref[...] = atom_loss + pos_loss + lat_loss


def criterion_forward(atoms_pred, atoms_label, mask,
                      positions_pred, positions_gt,
                      lattice_pred, lattice_gt,
                      *, tile_rows=None):
    """y_pred = {atoms:(N,C), positions:(N,3), lattice:(B,3,3)}
       y_gt   = {atoms:(N,), mask:(N,), positions:(3,N), lattice:(9,B)}"""
    n, c = atoms_pred.shape
    b = lattice_pred.shape[0]

    # Layout-only glue matching PyTorch's .t()/.view(); NO dtype casts here —
    # the kernel upcasts to f32 after the (possibly bf16) data is in VMEM.
    labels_2d = atoms_label.astype(jnp.int32).reshape(n, 1)
    mask_2d = mask.reshape(n, 1)
    pos_pred_t = positions_pred.T                    # (N,3) -> (3,N): lane-dense over N
    pos_gt = positions_gt                            # already (3, N), untouched
    lat_pred_flat = lattice_pred.reshape(b, 9)
    lat_gt_flat = lattice_gt.T.reshape(b, 9)         # (9,B) -> (B,9); mean-L1 invariant

    if tile_rows is None:
        tile_rows = _choose_tile_rows(n, c, atoms_pred.dtype.itemsize)
    grid = (pl.cdiv(n, tile_rows),)

    bytes_accessed = int(
        atoms_pred.size * atoms_pred.dtype.itemsize
        + labels_2d.size * 4
        + mask_2d.size * mask_2d.dtype.itemsize
        + pos_pred_t.size * pos_pred_t.dtype.itemsize
        + pos_gt.size * pos_gt.dtype.itemsize
        + lat_pred_flat.size * lat_pred_flat.dtype.itemsize
        + lat_gt_flat.size * lat_gt_flat.dtype.itemsize
        + 4)
    cost = pl.CostEstimate(
        flops=int(6 * n * c + 6 * pos_pred_t.size + 6 * lat_pred_flat.size),
        transcendentals=int(n * c),
        bytes_accessed=bytes_accessed)

    out = pl.pallas_call(
        functools.partial(_criterion_kernel, n_total=n),
        out_shape=jax.ShapeDtypeStruct((1, 1), jnp.float32),
        grid=grid,
        in_specs=[
            pl.BlockSpec((tile_rows, c), lambda i: (i, 0)),   # logits   (tiled over N)
            pl.BlockSpec((tile_rows, 1), lambda i: (i, 0)),   # labels   (tiled over N)
            pl.BlockSpec((tile_rows, 1), lambda i: (i, 0)),   # mask     (tiled over N)
            pl.BlockSpec((3, n), lambda i: (0, 0)),           # positions_pred.T (resident)
            pl.BlockSpec((3, n), lambda i: (0, 0)),           # positions_gt     (resident)
            pl.BlockSpec((b, 9), lambda i: (0, 0)),           # lattice_pred flat
            pl.BlockSpec((b, 9), lambda i: (0, 0)),           # lattice_gt flat
        ],
        out_specs=pl.BlockSpec((1, 1), lambda i: (0, 0)),
        scratch_shapes=[pltpu.VMEM((1, 1), jnp.float32),      # ce_sum accumulator
                        pltpu.VMEM((1, 1), jnp.float32)],     # mask_sum accumulator
        compiler_params=pltpu.CompilerParams(
            dimension_semantics=("arbitrary",)),
        cost_estimate=cost,
    )(atoms_pred, labels_2d, mask_2d, pos_pred_t, pos_gt,
      lat_pred_flat, lat_gt_flat)
    return out[0, 0]


def _reference_forward(atoms_pred, atoms_label, mask,
                       positions_pred, positions_gt,
                       lattice_pred, lattice_gt):
    logits = atoms_pred.astype(jnp.float32)
    logp = jax.nn.log_softmax(logits, axis=-1)
    ce = -jnp.take_along_axis(logp, atoms_label[:, None].astype(jnp.int32), axis=-1)[:, 0]
    m = mask.astype(jnp.float32)
    atom_loss = jnp.sum(ce * m) / jnp.sum(m)
    pos_loss = jnp.mean(jnp.abs(positions_pred.astype(jnp.float32)
                                - positions_gt.T.astype(jnp.float32)))
    lat_loss = jnp.mean(jnp.abs(lattice_pred.astype(jnp.float32)
                                - lattice_gt.T.reshape(-1, 3, 3).astype(jnp.float32)))
    return atom_loss + pos_loss + lat_loss


if __name__ == "__main__":
    def make_inputs(key, n, c, b, logits_dtype):
        k1, k2, k3, k4, k5, k6, k7 = jax.random.split(key, 7)
        atoms_pred = jax.random.normal(k1, (n, c), dtype=jnp.float32).astype(logits_dtype)
        atoms_label = jax.random.randint(k2, (n,), 0, c, dtype=jnp.int32)
        mask = (jax.random.uniform(k3, (n,)) > 0.3).astype(jnp.float32)
        mask = mask.at[0].set(1.0)                  # ensure mask.sum() > 0
        positions_pred = jax.random.normal(k4, (n, 3), dtype=jnp.float32)
        positions_gt = jax.random.normal(k5, (3, n), dtype=jnp.float32)   # PyTorch layout
        lattice_pred = jax.random.normal(k6, (b, 3, 3), dtype=jnp.float32)
        lattice_gt = jax.random.normal(k7, (9, b), dtype=jnp.float32)     # PyTorch layout
        return (atoms_pred, atoms_label, mask, positions_pred, positions_gt,
                lattice_pred, lattice_gt)

    # Case 1: tiny f32 problem (single tile, grid of 1).
    args1 = make_inputs(jax.random.PRNGKey(0), 8, 32, 2, jnp.float32)
    loss1 = criterion_forward(*args1)
    jax.block_until_ready(loss1)
    ref1 = _reference_forward(*args1)
    assert jnp.allclose(loss1, ref1, rtol=1e-5, atol=1e-5), (loss1, ref1)

    # Case 2: bf16 logits fed without wrapper casts; multi-tile grid with a
    # padded tail (N=300, tile_rows=128 -> 3 grid steps, last one masked).
    args2 = make_inputs(jax.random.PRNGKey(1), 300, 40, 3, jnp.bfloat16)
    loss2 = criterion_forward(*args2, tile_rows=128)
    jax.block_until_ready(loss2)
    ref2 = _reference_forward(*args2)
    assert jnp.allclose(loss2, ref2, rtol=1e-5, atol=1e-5), (loss2, ref2)

    print("KERNEL_OK")
</pallas_src>

<mosaic_0001>
module attributes {stable_mosaic.version = 11 : i64} {
  func.func @_criterion_kernel(%arg0: i32, %arg1: memref<8x32xf32, #tpu.memory_space<vmem>>, %arg2: memref<8x1xi32, #tpu.memory_space<vmem>>, %arg3: memref<8x1xf32, #tpu.memory_space<vmem>>, %arg4: memref<3x8xf32, #tpu.memory_space<vmem>>, %arg5: memref<3x8xf32, #tpu.memory_space<vmem>>, %arg6: memref<2x9xf32, #tpu.memory_space<vmem>>, %arg7: memref<2x9xf32, #tpu.memory_space<vmem>>, %arg8: memref<1x1xf32, #tpu.memory_space<vmem>>, %arg9: memref<1x1xf32, #tpu.memory_space<vmem>>, %arg10: memref<1x1xf32, #tpu.memory_space<vmem>>) attributes {dimension_semantics = [#tpu.dimension_semantics<arbitrary>], iteration_bounds = array<i64: 1>, scalar_prefetch = 0 : i64, scratch_operands = 2 : i64, tpu.core_type = #tpu.core_type<tc>, window_params = [{transform_indices = @transform_0, window_bounds = array<i64: 8, 32>}, {transform_indices = @transform_1, window_bounds = array<i64: 8, 1>}, {transform_indices = @transform_2, window_bounds = array<i64: 8, 1>}, {pipeline_mode = #tpu.pipeline_mode<synchronous>, transform_indices = @transform_3, window_bounds = array<i64: 3, 8>}, {pipeline_mode = #tpu.pipeline_mode<synchronous>, transform_indices = @transform_4, window_bounds = array<i64: 3, 8>}, {pipeline_mode = #tpu.pipeline_mode<synchronous>, transform_indices = @transform_5, window_bounds = array<i64: 2, 9>}, {pipeline_mode = #tpu.pipeline_mode<synchronous>, transform_indices = @transform_6, window_bounds = array<i64: 2, 9>}, {pipeline_mode = #tpu.pipeline_mode<synchronous>, transform_indices = @transform_7, window_bounds = array<i64: 1, 1>}]} {
    %c0_i32 = arith.constant 0 : i32
    %0 = arith.cmpi eq, %arg0, %c0_i32 : i32
    %1 = arith.extui %0 : i1 to i32
    %c0_i32_0 = arith.constant 0 : i32
    %2 = arith.cmpi ne, %1, %c0_i32_0 : i32
    scf.if %2 {
      %cst_24 = arith.constant 0.000000e+00 : f32
      %52 = vector.broadcast %cst_24 : f32 to vector<1x1xf32>
      %c0_25 = arith.constant 0 : index
      %c0_26 = arith.constant 0 : index
      %53 = vector.load %arg9[%c0_25, %c0_26] : memref<1x1xf32, #tpu.memory_space<vmem>>, vector<1x1xf32>
      tpu.vector_store %arg9[%c0_25, %c0_26], %52 {strides = array<i32>} : memref<1x1xf32, #tpu.memory_space<vmem>>, vector<1x1xf32>,
      %cst_27 = arith.constant 0.000000e+00 : f32
      %54 = vector.broadcast %cst_27 : f32 to vector<1x1xf32>
      %c0_28 = arith.constant 0 : index
      %c0_29 = arith.constant 0 : index
      %55 = vector.load %arg10[%c0_28, %c0_29] : memref<1x1xf32, #tpu.memory_space<vmem>>, vector<1x1xf32>
      tpu.vector_store %arg10[%c0_28, %c0_29], %54 {strides = array<i32>} : memref<1x1xf32, #tpu.memory_space<vmem>>, vector<1x1xf32>,
    } else {
    }
    %c0 = arith.constant 0 : index
    %c0_1 = arith.constant 0 : index
    %3 = vector.load %arg1[%c0, %c0_1] : memref<8x32xf32, #tpu.memory_space<vmem>>, vector<8x32xf32>
    %cst = arith.constant dense<0xFF800000> : vector<8xf32>
    %4 = vector.multi_reduction <maximumf>, %3, %cst [1] : vector<8x32xf32> to vector<8xf32>
    %5 = vector.shape_cast %4 : vector<8xf32> to vector<8x1xf32>
    %6 = vector.broadcast %5 : vector<8x1xf32> to vector<8x32xf32>
    %7 = arith.subf %3, %6 : vector<8x32xf32>
    %8 = math.exp %7 : vector<8x32xf32>
    %cst_2 = arith.constant dense<0.000000e+00> : vector<8xf32>
    %9 = vector.multi_reduction <add>, %8, %cst_2 [1] : vector<8x32xf32> to vector<8xf32>
    %10 = vector.shape_cast %9 : vector<8xf32> to vector<8x1xf32>
    %c0_3 = arith.constant 0 : index
    %c0_4 = arith.constant 0 : index
    %11 = vector.load %arg2[%c0_3, %c0_4] : memref<8x1xi32, #tpu.memory_space<vmem>>, vector<8x1xi32>
    %12 = tpu.iota {dimensions = array<i32: 1>} : vector<8x32xi32>
    %13 = vector.broadcast %11 : vector<8x1xi32> to vector<8x32xi32>
    %14 = arith.cmpi eq, %12, %13 : vector<8x32xi32>
    %cst_5 = arith.constant 0.000000e+00 : f32
    %15 = vector.broadcast %cst_5 : f32 to vector<8x32xf32>
    %16 = arith.select %14, %7, %15 : vector<8x32xi1>, vector<8x32xf32>
    %cst_6 = arith.constant dense<0.000000e+00> : vector<8xf32>
    %17 = vector.multi_reduction <add>, %16, %cst_6 [1] : vector<8x32xf32> to vector<8xf32>
    %18 = vector.shape_cast %17 : vector<8xf32> to vector<8x1xf32>
    %19 = math.log %10 : vector<8x1xf32>
    %20 = arith.subf %19, %18 : vector<8x1xf32>
    %c8_i32 = arith.constant 8 : i32
    %21 = arith.muli %arg0, %c8_i32 : i32
    %22 = tpu.iota {dimensions = array<i32: 0>} : vector<8x1xi32>
    %23 = vector.broadcast %21 : i32 to vector<8x1xi32>
    %24 = arith.addi %23, %22 : vector<8x1xi32>
    %c8_i32_7 = arith.constant 8 : i32
    %25 = vector.broadcast %c8_i32_7 : i32 to vector<8x1xi32>
    %26 = arith.cmpi slt, %24, %25 : vector<8x1xi32>
    %c0_8 = arith.constant 0 : index
    %c0_9 = arith.constant 0 : index
    %27 = vector.load %arg3[%c0_8, %c0_9] : memref<8x1xf32, #tpu.memory_space<vmem>>, vector<8x1xf32>
    %28 = arith.mulf %20, %27 : vector<8x1xf32>
    %cst_10 = arith.constant 0.000000e+00 : f32
    %29 = vector.broadcast %cst_10 : f32 to vector<8x1xf32>
    %30 = arith.select %26, %28, %29 : vector<8x1xi1>, vector<8x1xf32>
    %cst_11 = arith.constant 0.000000e+00 : f32
    %31 = vector.broadcast %cst_11 : f32 to vector<8x1xf32>
    %32 = arith.select %26, %27, %31 : vector<8x1xi1>, vector<8x1xf32>
    %c0_12 = arith.constant 0 : index
    %c0_13 = arith.constant 0 : index
    %33 = vector.load %arg9[%c0_12, %c0_13] : memref<1x1xf32, #tpu.memory_space<vmem>>, vector<1x1xf32>
    %34 = vector.shape_cast %30 : vector<8x1xf32> to vector<1x8x1xf32>
    %cst_14 = arith.constant dense<0.000000e+00> : vector<1xf32>
    %35 = vector.multi_reduction <add>, %34, %cst_14 [1, 2] : vector<1x8x1xf32> to vector<1xf32>
    %36 = vector.shape_cast %35 : vector<1xf32> to vector<1x1x1xf32>
    %37 = vector.extract %36[0, 0, 0] : f32 from vector<1x1x1xf32>
    %38 = vector.broadcast %37 : f32 to vector<1x1xf32>
    %39 = arith.addf %33, %38 : vector<1x1xf32>
    %c0_15 = arith.constant 0 : index
    %c0_16 = arith.constant 0 : index
    %40 = vector.load %arg9[%c0_15, %c0_16] : memref<1x1xf32, #tpu.memory_space<vmem>>, vector<1x1xf32>
    tpu.vector_store %arg9[%c0_15, %c0_16], %39 {strides = array<i32>} : memref<1x1xf32, #tpu.memory_space<vmem>>, vector<1x1xf32>,
    %c0_17 = arith.constant 0 : index
    %c0_18 = arith.constant 0 : index
    %41 = vector.load %arg10[%c0_17, %c0_18] : memref<1x1xf32, #tpu.memory_space<vmem>>, vector<1x1xf32>
    %42 = vector.shape_cast %32 : vector<8x1xf32> to vector<1x8x1xf32>
    %cst_19 = arith.constant dense<0.000000e+00> : vector<1xf32>
    %43 = vector.multi_reduction <add>, %42, %cst_19 [1, 2] : vector<1x8x1xf32> to vector<1xf32>
    %44 = vector.shape_cast %43 : vector<1xf32> to vector<1x1x1xf32>
    %45 = vector.extract %44[0, 0, 0] : f32 from vector<1x1x1xf32>
    %46 = vector.broadcast %45 : f32 to vector<1x1xf32>
    %47 = arith.addf %41, %46 : vector<1x1xf32>
    %c0_20 = arith.constant 0 : index
    %c0_21 = arith.constant 0 : index
    %48 = vector.load %arg10[%c0_20, %c0_21] : memref<1x1xf32, #tpu.memory_space<vmem>>, vector<1x1xf32>
    tpu.vector_store %arg10[%c0_20, %c0_21], %47 {strides = array<i32>} : memref<1x1xf32, #tpu.memory_space<vmem>>, vector<1x1xf32>,
    %c0_i32_22 = arith.constant 0 : i32
    %49 = arith.cmpi eq, %arg0, %c0_i32_22 : i32
    %50 = arith.extui %49 : i1 to i32
    %c0_i32_23 = arith.constant 0 : i32
    %51 = arith.cmpi ne, %50, %c0_i32_23 : i32
    scf.if %51 {
      %c0_24 = arith.constant 0 : index
      %c0_25 = arith.constant 0 : index
      %52 = vector.load %arg4[%c0_24, %c0_25] : memref<3x8xf32, #tpu.memory_space<vmem>>, vector<3x8xf32>
      %c0_26 = arith.constant 0 : index
      %c0_27 = arith.constant 0 : index
      %53 = vector.load %arg5[%c0_26, %c0_27] : memref<3x8xf32, #tpu.memory_space<vmem>>, vector<3x8xf32>
      %54 = arith.subf %52, %53 : vector<3x8xf32>
      %55 = math.absf %54 : vector<3x8xf32>
      %56 = vector.shape_cast %55 : vector<3x8xf32> to vector<1x3x8xf32>
      %cst_28 = arith.constant dense<0.000000e+00> : vector<1xf32>
      %57 = vector.multi_reduction <add>, %56, %cst_28 [1, 2] : vector<1x3x8xf32> to vector<1xf32>
      %58 = vector.shape_cast %57 : vector<1xf32> to vector<1x1x1xf32>
      %59 = vector.extract %58[0, 0, 0] : f32 from vector<1x1x1xf32>
      %60 = vector.broadcast %59 : f32 to vector<1x1xf32>
      %cst_29 = arith.constant 0.0416666679 : f32
      %61 = vector.broadcast %cst_29 : f32 to vector<1x1xf32>
      %62 = arith.mulf %60, %61 : vector<1x1xf32>
      %c0_30 = arith.constant 0 : index
      %c0_31 = arith.constant 0 : index
      %63 = vector.load %arg6[%c0_30, %c0_31] : memref<2x9xf32, #tpu.memory_space<vmem>>, vector<2x9xf32>
      %c0_32 = arith.constant 0 : index
      %c0_33 = arith.constant 0 : index
      %64 = vector.load %arg7[%c0_32, %c0_33] : memref<2x9xf32, #tpu.memory_space<vmem>>, vector<2x9xf32>
      %65 = arith.subf %63, %64 : vector<2x9xf32>
      %66 = math.absf %65 : vector<2x9xf32>
      %67 = vector.shape_cast %66 : vector<2x9xf32> to vector<1x2x9xf32>
      %cst_34 = arith.constant dense<0.000000e+00> : vector<1xf32>
      %68 = vector.multi_reduction <add>, %67, %cst_34 [1, 2] : vector<1x2x9xf32> to vector<1xf32>
      %69 = vector.shape_cast %68 : vector<1xf32> to vector<1x1x1xf32>
      %70 = vector.extract %69[0, 0, 0] : f32 from vector<1x1x1xf32>
      %71 = vector.broadcast %70 : f32 to vector<1x1xf32>
      %cst_35 = arith.constant 0.055555556 : f32
      %72 = vector.broadcast %cst_35 : f32 to vector<1x1xf32>
      %73 = arith.mulf %71, %72 : vector<1x1xf32>
      %c0_36 = arith.constant 0 : index
      %c0_37 = arith.constant 0 : index
      %74 = vector.load %arg9[%c0_36, %c0_37] : memref<1x1xf32, #tpu.memory_space<vmem>>, vector<1x1xf32>
      %c0_38 = arith.constant 0 : index
      %c0_39 = arith.constant 0 : index
      %75 = vector.load %arg10[%c0_38, %c0_39] : memref<1x1xf32, #tpu.memory_space<vmem>>, vector<1x1xf32>
      %76 = tpu.reciprocal %75 : vector<1x1xf32> -> vector<1x1xf32>
      %77 = arith.mulf %74, %76 : vector<1x1xf32>
      %78 = arith.addf %77, %62 : vector<1x1xf32>
      %79 = arith.addf %78, %73 : vector<1x1xf32>
      %c0_40 = arith.constant 0 : index
      %c0_41 = arith.constant 0 : index
      %80 = vector.load %arg8[%c0_40, %c0_41] : memref<1x1xf32, #tpu.memory_space<vmem>>, vector<1x1xf32>
      tpu.vector_store %arg8[%c0_40, %c0_41], %79 {strides = array<i32>} : memref<1x1xf32, #tpu.memory_space<vmem>>, vector<1x1xf32>,
    } else {
    }
    return
  }
  func.func @transform_0(%arg0: i32) -> (i32, i32) {
    %c0_i32 = arith.constant 0 : i32
    %c0_i32_0 = arith.constant 0 : i32
    return %arg0, %c0_i32 : i32, i32
  }
  func.func @transform_1(%arg0: i32) -> (i32, i32) {
    %c0_i32 = arith.constant 0 : i32
    %c0_i32_0 = arith.constant 0 : i32
    return %arg0, %c0_i32 : i32, i32
  }
  func.func @transform_2(%arg0: i32) -> (i32, i32) {
    %c0_i32 = arith.constant 0 : i32
    %c0_i32_0 = arith.constant 0 : i32
    return %arg0, %c0_i32 : i32, i32
  }
  func.func @transform_3(%arg0: i32) -> (i32, i32) {
    %c0_i32 = arith.constant 0 : i32
    %c0_i32_0 = arith.constant 0 : i32
    %c0_i32_1 = arith.constant 0 : i32
    return %c0_i32, %c0_i32_0 : i32, i32
  }
  func.func @transform_4(%arg0: i32) -> (i32, i32) {
    %c0_i32 = arith.constant 0 : i32
    %c0_i32_0 = arith.constant 0 : i32
    %c0_i32_1 = arith.constant 0 : i32
    return %c0_i32, %c0_i32_0 : i32, i32
  }
  func.func @transform_5(%arg0: i32) -> (i32, i32) {
    %c0_i32 = arith.constant 0 : i32
    %c0_i32_0 = arith.constant 0 : i32
    %c0_i32_1 = arith.constant 0 : i32
    return %c0_i32, %c0_i32_0 : i32, i32
  }
  func.func @transform_6(%arg0: i32) -> (i32, i32) {
    %c0_i32 = arith.constant 0 : i32
    %c0_i32_0 = arith.constant 0 : i32
    %c0_i32_1 = arith.constant 0 : i32
    return %c0_i32, %c0_i32_0 : i32, i32
  }
  func.func @transform_7(%arg0: i32) -> (i32, i32) {
    %c0_i32 = arith.constant 0 : i32
    %c0_i32_0 = arith.constant 0 : i32
    %c0_i32_1 = arith.constant 0 : i32
    return %c0_i32, %c0_i32_0 : i32, i32
  }
}

</mosaic_0001>

<bundles_post_ra>
// kernel: tpu_custom_call.1
= control target key start
LH: loop header
LB: loop body
LE: loop exit
PB: predicated region body
PF: predicated region fallthrough
CT: control target
= control target key end

     0   :  { %vm35_vm0 = vcmask 261120   ;;  %s283_s0 = inlined_call_operand.vmem [shape: f32[8,32], index: 0, kind: input, shape index: {}]   ;;  %s284_s1 = inlined_call_operand.vmem [shape: s32[8,1], index: 1, kind: input, shape index: {}]   ;;  %s285_s2 = inlined_call_operand.vmem [shape: f32[8,1], index: 2, kind: input, shape index: {}]   ;;  %s286_s3 = inlined_call_operand.vmem [shape: f32[3,8], index: 3, kind: input, shape index: {}]   ;;  %s287_s4 = inlined_call_operand.vmem [shape: f32[3,8], index: 4, kind: input, shape index: {}]   ;;  %s288_s5 = inlined_call_operand.vmem [shape: f32[2,9], index: 5, kind: input, shape index: {}]   ;;  %s289_s6 = inlined_call_operand.vmem [shape: f32[2,9], index: 6, kind: input, shape index: {}]   ;;  %s290_s7 = inlined_call_operand.hbm [shape: f32[1,1], index: 7, kind: output, shape index: {}]  }
   0x1   :  { %v34_v0 = vld [vmem:[%s283_s0] sm:$0xff] }
   0x2   :  { %12 = vsyncpa [#allocation5], 0  ;;  %v36_v1 = vsel %vm35_vm0, %v34_v0, -inf  ;;  %v199_v2 = vmov 0   ;;  %v45_v3 = vld [vmem:[%s284_s1] sm:$0xff]  ;;  %v46_v7 = vlaneseq  ;;  %vm70_vm2 = vcmask 7168  }
   0x3   :  { %168 = vset.pattern.permute.xlu0 %v199_v2  ;;  %v65_v18 = vld [vmem:[%s285_s2] sm:$0xff]  ;;  %vm106_vm3 = vcmask 59392   ;;  %vm123_vm4 = vcmask 66560   ;;  %vm31_vm5 = vcmask 0   ;;  %v200_v33 = vmov 0.0  }
   0x4   :  { %37 = vmax.xlane.f32.xlu0 %v36_v1  ;;  %v47_v8 = vand.u32 127, %v46_v7  ;;  %v102_v19 = vld [vmem:[%s286_s3] sm:$0x7]  ;;  %v86_v27 = vsel %vm70_vm2, %v65_v18, 0.0  ;;  %32 = vst.msk [vmem:[#allocation2] sm:$0x1] %vm31_vm5, %v200_v33 }
   0x5   :  { %v103_v20 = vld [vmem:[%s287_s4] sm:$0x7]  ;;  %33 = vst.msk [vmem:[#allocation3] sm:$0x1] %vm31_vm5, %v200_v33 }
   0x6   :  { %v104_v23 = vsub.f32 %v102_v19, %v103_v20  ;;  %v119_v24 = vld [vmem:[%s288_s5] sm:$0x3] }
   0x7   :  { %v120_v25 = vld [vmem:[%s289_s6] sm:$0x3]  ;;  %s201_s6 = smov [#allocation4]  }
   0x8   :  { %v105_v28 = vand.u32 2147483647, %v104_v23  ;;  %v121_v29 = vsub.f32 %v119_v24, %v120_v25  ;;  %s149_s13 = sshll.u32 %s201_s6, 4  ;;  %s150_s13 = int_to_ptr.vmem [resolvable:$true] %s149_s13 }
   0x9   :  { %s175_s14 = scalar_lea.vmem %s150_s13, 16  ;;  %s179_s15 = scalar_lea.vmem %s150_s13, 32 }
   0xa   :  { %v107_v30 = vsel %vm106_vm3, %v105_v28, 0.0  ;;  %v122_v31 = vand.u32 2147483647, %v121_v29  ;;  %p176_p0 = scmp.ne.s32.totalorder %s150_s13, %s175_s14  ;;  %p180_p1 = scmp.lt.s32.totalorder %s150_s13, %s150_s13 }
   0xb   :  { %v69_v62 = vld [vmem:[#allocation2] sm:$0x1]  ;;  %p181_p2 = scmp.lt.s32.totalorder %s179_s15, %s175_s14 }
   0xc   :  { %v124_v32 = vsel %vm123_vm4, %v122_v31, 0.0  ;;  %v85_v1 = vld [vmem:[#allocation3] sm:$0x1] }
   0xd   :  { %p182_p3 = por %p181_p2, %p180_p1 }
   0xf   :  { %p183_p4 = pnand %p182_p3, %p176_p0 }
  0x1a   :  { %49 = vperm.xlu0 %168, %v45_v3  }
  0x91   :  { %v38_v4 = vpop.xlane.xlu0 %37 }
  0x92   :  { %v39_v5 = vsub.f32 %v34_v0, %v38_v4 }
  0x94   :  { %v40_v6 = vmul.f32 1.442695, %v39_v5 }
  0x96   :  { %169 = vpow2.f32 %v40_v6 }
  0x99   :  { %v50_v9 = vpop.permute.xlu0 %49 }
  0x9a   :  { %vm51_vm1 = vcmp.eq.s32.totalorder %v47_v8, %v50_v9 }
  0x9b   :  { %v52_v12 = vsel %vm51_vm1, %v39_v5, 0.0 }
  0x9c   :  { %v53_v13 = vsel %vm35_vm0, %v52_v12, 0.0 }
  0xa0   :  { %v170_v10 = vpop.eup %169 }
  0xa1   :  { %v42_v11 = vsel %vm35_vm0, %v170_v10, 0.0 }
  0xa2   :  { %43 = vadd.xlane.f32.xlu1 %v42_v11 }
  0xa6   :  { %54 = vadd.xlane.f32.xlu1 %v53_v13 }
 0x12f   :  { %v44_v14 = vpop.xlane.xlu1 %43 }
 0x130   :  { %171 = vlog2.f32 %v44_v14 }
 0x133   :  { %v55_v17 = vpop.xlane.xlu1 %54 }
 0x13a   :  { %v172_v15 = vpop.eup %171 }
 0x13b   :  { %v57_v16 = vmul.f32 0.6931472, %v172_v15 }
 0x13d   :  { %v58_v21 = vsub.f32 %v57_v16, %v55_v17 }
 0x13f   :  { %v66_v22 = vmul.f32 %v65_v18, %v58_v21 }
 0x141   :  { %v71_v26 = vsel %vm70_vm2, %v66_v22, 0.0 }
 0x142   :  { %72 = vadd.xlane.f32.xlu1 %v71_v26 }
 0x146   :  { %87 = vadd.xlane.f32.xlu1 %v86_v27 }
 0x14a   :  { %108 = vadd.xlane.f32.xlu1 %v107_v30 }
 0x14e   :  { %125 = vadd.xlane.f32.xlu1 %v124_v32 }
 0x1cf   :  { %v73_v34 = vpop.xlane.xlu1 %72 }
 0x1d0   :  { %v74_v35 = vrot.slane %v73_v34, 4 }
 0x1d2   :  { %v75_v36 = vadd.f32 %v74_v35, %v73_v34 }
 0x1d3   :  { %v88_v37 = vpop.xlane.xlu1 %87 }
 0x1d4   :  { %v76_v38 = vrot.slane %v75_v36, 2  ;;  %v89_v39 = vrot.slane %v88_v37, 4 }
 0x1d6   :  { %v90_v40 = vadd.f32 %v89_v39, %v88_v37  ;;  %v77_v41 = vadd.f32 %v76_v38, %v75_v36 }
 0x1d7   :  { %v109_v42 = vpop.xlane.xlu1 %108 }
 0x1d8   :  { %v91_v43 = vrot.slane %v90_v40, 2  ;;  %v78_v44 = vrot.slane %v77_v41, 1  ;;  %v110_v45 = vrot.slane %v109_v42, 4 }
 0x1da   :  { %v79_v46 = vadd.f32 %v78_v44, %v77_v41  ;;  %v92_v47 = vadd.f32 %v91_v43, %v90_v40  ;;  %v111_v48 = vadd.f32 %v110_v45, %v109_v42 }
 0x1db   :  { %v126_v49 = vpop.xlane.xlu1 %125 }
 0x1dc   :  { %157 = vpush %v79_v46  ;;  %v93_v50 = vrot.slane %v92_v47, 1  ;;  %v112_v51 = vrot.slane %v111_v48, 2  ;;  %v127_v52 = vrot.slane %v126_v49, 4 }
 0x1de   :  { %v94_v53 = vadd.f32 %v93_v50, %v92_v47  ;;  %v128_v54 = vadd.f32 %v127_v52, %v126_v49  ;;  %v113_v55 = vadd.f32 %v112_v51, %v111_v48 }
 0x1e0   :  { %159 = vpush %v94_v53  ;;  %v129_v56 = vrot.slane %v128_v54, 2  ;;  %v114_v57 = vrot.slane %v113_v55, 1 }
 0x1e2   :  { %v130_v58 = vadd.f32 %v129_v56, %v128_v54  ;;  %v115_v59 = vadd.f32 %v114_v57, %v113_v55 }
 0x1e4   :  { %161 = vpush %v115_v59  ;;  %v131_v60 = vrot.slane %v130_v58, 1 }
 0x1e6   :  { %v132_v61 = vadd.f32 %v131_v60, %v130_v58 }
 0x1e8   :  { %163 = vpush %v132_v61 }
 0x20d   :  { %s158_s2 = spop %157 }
 0x20e   :  { %v81_v63 = vstv %s158_s2 }
 0x20f   :  { %v82_v0 = vadd.f32 %v81_v63, %v69_v62 }
 0x211   :  { %84 = vst.msk [vmem:[#allocation2] sm:$0x1] %vm31_vm5, %v82_v0  ;;  %s160_s3 = spop %159 }
 0x212   :  { %v96_v2 = vstv %s160_s3 }
 0x213   :  { %v97_v3 = vadd.f32 %v96_v2, %v85_v1 }
 0x215   :  { %98 = vst.msk [vmem:[#allocation3] sm:$0x1] %vm31_vm5, %v97_v3  ;;  %s162_s4 = spop %161 }
 0x216   :  { %v117_v5 = vstv %s162_s4 }
 0x217   :  { %v118_v9 = vmul.f32 0.041666668, %v117_v5 }
 0x218   :  { %v136_v7 = vld [vmem:[#allocation2] sm:$0x1] }
 0x219   :  { %s164_s5 = spop %163 }
 0x21a   :  { %v134_v8 = vstv %s164_s5 }
 0x21b   :  { %v135_v12 = vmul.f32 0.055555556, %v134_v8 }
 0x21c   :  { %v137_v4 = vld [vmem:[#allocation3] sm:$0x1] }
 0x21d   :  { %173 = vrcp.f32 %v137_v4 }
 0x227   :  { %v174_v6 = vpop.eup %173 }
 0x228   :  { %v139_v10 = vmul.f32 %v174_v6, %v136_v7 }
 0x22a   :  { %v140_v11 = vadd.f32 %v139_v10, %v118_v9 }
 0x22c   :  { %v141_v13 = vadd.f32 %v140_v11, %v135_v12 }
 0x22e   :  { %142 = vst.msk [vmem:[#allocation4] sm:$0x1] %vm31_vm5, %v141_v13 }
 0x22f   :  { %186 = shalt.err (!%p183_p4)
}
 0x230   :  { %s187_s18 = scalar_lea.hbm %s290_s7, 16 }
 0x231   :  { %p188_p5 = scmp.ne.s32.totalorder %s290_s7, %s187_s18  ;;  %p191_p6 = scmp.lt.u32.totalorder %s187_s18, %s290_s7 }
 0x233   :  { %p193_p7 = pnand %p191_p6, %p188_p5 }
 0x235   :  { %196 = shalt.err (!%p193_p7)
}
 0x236   :  { %152 = dma.vmem_to_hbm [thread:$0]  %s150_s13, 16, %s290_s7, [#allocation5]  }
 0x237   :  { %197 = dma.done.wait [#allocation5], 16  }
 0x238   :  { %198 = vsyncadd [#allocation5], 4294967280 }
 0x239   :  { %156 = vsyncpa [#allocation5], 1 }

</bundles_post_ra>
